<compile_context>
chip_gen: v6e
topology: v6e:2x2x1
jax: 0.10.0
libtpu: 0.0.40
codegen_flags: <defaults>
</compile_context>

<pallas_src>
import functools

import jax
import jax.numpy as jnp
from jax.experimental import pallas as pl
from jax.experimental.pallas import tpu as pltpu


def _repeat_block_kernel(x_ref, xp_ref, w_ref, b_ref, ox_ref, oxp_ref, comb_ref,
                         *, n_blocks):
    """Runs the full n_blocks chain for one (sample, spatial-tile) in VMEM.

    x_ref, xp_ref, ox_ref, oxp_ref : (C, T)  activations, spatial on lanes
    w_ref : (n_blocks, C, 2C)  fused per-block weight; even blocks hold
            [W1^T | W2^T], odd blocks [W2^T | W1^T] (matches slot ping-pong)
    b_ref : (n_blocks, C, 1)   per-block bias column
    comb_ref : VMEM scratch (2C, T) f32; the two C-row slots hold x / x_prev
               and swap roles every block (no per-block copy).
    """
    C = x_ref.shape[0]

    # Load both activations into the combined scratch once (slot A=x, slot B=xp).
    comb_ref[pl.ds(0, C), :] = x_ref[...].astype(jnp.float32)
    comb_ref[pl.ds(C, C), :] = xp_ref[...].astype(jnp.float32)

    # Static (fully unrolled) chain: blk is a Python int, so every slice offset
    # and weight index is static.  x_new overwrites the current x_prev slot;
    # the other slot (the old x) automatically becomes the new x_prev.
    for blk in range(n_blocks):
        dst = C if (blk % 2 == 0) else 0
        acc = jnp.dot(w_ref[blk], comb_ref[...],
                      preferred_element_type=jnp.float32)
        comb_ref[pl.ds(dst, C), :] = jnp.maximum(acc + b_ref[blk], 0.0)

    # Final slot assignment is a static function of n_blocks parity.
    x_off = 0 if (n_blocks % 2 == 0) else C
    xp_off = C - x_off
    ox_ref[...] = comb_ref[pl.ds(x_off, C), :].astype(ox_ref.dtype)
    oxp_ref[...] = comb_ref[pl.ds(xp_off, C), :].astype(oxp_ref.dtype)


def init_repeat_block_params(key, n_blocks, n_channels):
    """Deterministic per-block params: list of (W1, W2, bias(1,C))."""
    params = []
    for _ in range(n_blocks):
        k1, k2, k3, key = jax.random.split(key, 4)
        scale = 1.0 / jnp.sqrt(jnp.float32(n_channels))
        w1 = jax.random.normal(k1, (n_channels, n_channels), jnp.float32) * scale
        w2 = jax.random.normal(k2, (n_channels, n_channels), jnp.float32) * scale
        b = jax.random.normal(k3, (1, n_channels), jnp.float32) * 0.1
        params.append((w1, w2, b))
    return params


def stack_params(params):
    """Stack per-block (W1, W2, b) into kernel form.

    Even blocks: [W1^T | W2^T]; odd blocks: [W2^T | W1^T].  This matches the
    in-kernel slot ping-pong (x and x_prev swap slots every block), so the
    kernel never has to copy activations between slots.
    Returns w_stack (n_blocks, C, 2C) and b_stack (n_blocks, C, 1).
    """
    mats = []
    for i, (w1, w2, _) in enumerate(params):
        if i % 2 == 0:
            mats.append(jnp.concatenate([w1.T, w2.T], axis=1))
        else:
            mats.append(jnp.concatenate([w2.T, w1.T], axis=1))
    w_stack = jnp.stack(mats, axis=0)
    b_stack = jnp.stack([b.reshape(-1, 1) for (_, _, b) in params], axis=0)
    return w_stack, b_stack


def _pick_hw_tile(hw, max_tile=2048):
    """Largest lane-friendly spatial tile: full HW if small, else a multiple of
    128 that divides HW (keeps blocks (8,128)-legal and VMEM bounded)."""
    if hw <= max_tile:
        return hw
    t = max_tile - (max_tile % 128)
    while t >= 128:
        if hw % t == 0:
            return t
        t -= 128
    return hw


def repeat_block_forward(w_stack, b_stack, x_nchw, xprev_nchw):
    """RepeatBlock.forward: chains all blocks inside one Pallas kernel.

    x_nchw, xprev_nchw: (N, C, H, W) float32. Returns (x, x_prev) in NCHW.
    """
    N, C, H, W = x_nchw.shape
    HW = H * W
    n_blocks = int(w_stack.shape[0])
    if n_blocks == 0:                      # empty chain: identity
        return x_nchw, xprev_nchw
    assert C % 8 == 0, "n_channels must be a multiple of 8 for sublane slicing"

    t_hw = _pick_hw_tile(HW)
    n_s = HW // t_hw

    # NCHW -> (N, C, HW): pure reshape, no transpose (spatial axis on lanes).
    x3 = x_nchw.reshape(N, C, HW)
    xp3 = xprev_nchw.reshape(N, C, HW)

    kernel = functools.partial(_repeat_block_kernel, n_blocks=n_blocks)

    out_x, out_xp = pl.pallas_call(
        kernel,
        out_shape=(jax.ShapeDtypeStruct((N, C, HW), x_nchw.dtype),
                   jax.ShapeDtypeStruct((N, C, HW), x_nchw.dtype)),
        grid_spec=pltpu.PrefetchScalarGridSpec(
            num_scalar_prefetch=0,
            grid=(N, n_s),
            in_specs=[
                pl.BlockSpec((None, C, t_hw), lambda n, s: (n, 0, s)),        # x
                pl.BlockSpec((None, C, t_hw), lambda n, s: (n, 0, s)),        # x_prev
                pl.BlockSpec((n_blocks, C, 2 * C), lambda n, s: (0, 0, 0)),   # weights (resident)
                pl.BlockSpec((n_blocks, C, 1), lambda n, s: (0, 0, 0)),       # biases  (resident)
            ],
            out_specs=[
                pl.BlockSpec((None, C, t_hw), lambda n, s: (n, 0, s)),        # x out
                pl.BlockSpec((None, C, t_hw), lambda n, s: (n, 0, s)),        # x_prev out
            ],
            scratch_shapes=[pltpu.VMEM((2 * C, t_hw), jnp.float32)],          # [x ; x_prev]
        ),
        compiler_params=pltpu.CompilerParams(
            dimension_semantics=("parallel", "parallel")),
    )(x3, xp3, w_stack, b_stack)

    return out_x.reshape(N, C, H, W), out_xp.reshape(N, C, H, W)


if __name__ == "__main__":
    n_blocks = 3
    n_channels = 32
    batch, spatial = 2, 16          # x: (2, 32, 16, 16), HW = 256 (lane-dense)

    key = jax.random.PRNGKey(0)
    kx, kp, kw = jax.random.split(key, 3)
    x = jax.random.normal(kx, (batch, n_channels, spatial, spatial), jnp.float32)
    x_prev = jax.random.normal(kp, (batch, n_channels, spatial, spatial),
                               jnp.float32)

    params = init_repeat_block_params(kw, n_blocks, n_channels)
    w_stack, b_stack = stack_params(params)

    out_x, out_xprev = repeat_block_forward(w_stack, b_stack, x, x_prev)
    jax.block_until_ready((out_x, out_xprev))

    # Pure-JAX reference of the same surrogate cell chain (original layout,
    # original un-swizzled weights).
    def ref_forward(params, x, x_prev):
        N, C, H, W = x.shape
        def to2d(a): return jnp.transpose(a, (0, 2, 3, 1)).reshape(-1, C)
        def to4d(a): return jnp.transpose(a.reshape(N, H, W, C), (0, 3, 1, 2))
        x2, xp2 = to2d(x), to2d(x_prev)
        for (w1, w2, b) in params:
            xn = jnp.maximum(x2 @ w1 + xp2 @ w2 + b, 0.0)
            xp2 = x2
            x2 = xn
        return to4d(x2), to4d(xp2)

    ref_x, ref_xprev = ref_forward(params, x, x_prev)
    assert jnp.allclose(out_x, ref_x, atol=1e-5, rtol=1e-5)
    assert jnp.allclose(out_xprev, ref_xprev, atol=1e-5, rtol=1e-5)
    print("KERNEL_OK")
</pallas_src>

<mosaic_0001>
module attributes {stable_mosaic.version = 11 : i64} {
  func.func @_repeat_block_kernel(%arg0: i32, %arg1: i32, %arg2: memref<1x32x256xf32, #tpu.memory_space<vmem>>, %arg3: memref<1x32x256xf32, #tpu.memory_space<vmem>>, %arg4: memref<3x32x64xf32, #tpu.memory_space<vmem>>, %arg5: memref<3x32x1xf32, #tpu.memory_space<vmem>>, %arg6: memref<1x32x256xf32, #tpu.memory_space<vmem>>, %arg7: memref<1x32x256xf32, #tpu.memory_space<vmem>>, %arg8: memref<64x256xf32, #tpu.memory_space<vmem>>) attributes {dimension_semantics = [#tpu.dimension_semantics<parallel>, #tpu.dimension_semantics<parallel>], iteration_bounds = array<i64: 2, 1>, scalar_prefetch = 0 : i64, scratch_operands = 1 : i64, tpu.core_type = #tpu.core_type<tc>, window_params = [{transform_indices = @transform_0, window_bounds = array<i64: 1, 32, 256>}, {transform_indices = @transform_1, window_bounds = array<i64: 1, 32, 256>}, {pipeline_mode = #tpu.pipeline_mode<synchronous>, transform_indices = @transform_2, window_bounds = array<i64: 3, 32, 64>}, {pipeline_mode = #tpu.pipeline_mode<synchronous>, transform_indices = @transform_3, window_bounds = array<i64: 3, 32, 1>}, {transform_indices = @transform_4, window_bounds = array<i64: 1, 32, 256>}, {transform_indices = @transform_5, window_bounds = array<i64: 1, 32, 256>}]} {
    %c0 = arith.constant 0 : index
    %c0_0 = arith.constant 0 : index
    %c0_1 = arith.constant 0 : index
    %0 = vector.load %arg2[%c0, %c0_0, %c0_1] : memref<1x32x256xf32, #tpu.memory_space<vmem>>, vector<1x32x256xf32>
    %1 = vector.shape_cast %0 : vector<1x32x256xf32> to vector<32x256xf32>
    %c0_2 = arith.constant 0 : index
    %c0_3 = arith.constant 0 : index
    %2 = vector.load %arg8[%c0_2, %c0_3] : memref<64x256xf32, #tpu.memory_space<vmem>>, vector<32x256xf32>
    tpu.vector_store %arg8[%c0_2, %c0_3], %1 {strides = array<i32>} : memref<64x256xf32, #tpu.memory_space<vmem>>, vector<32x256xf32>,
    %c0_4 = arith.constant 0 : index
    %c0_5 = arith.constant 0 : index
    %c0_6 = arith.constant 0 : index
    %3 = vector.load %arg3[%c0_4, %c0_5, %c0_6] : memref<1x32x256xf32, #tpu.memory_space<vmem>>, vector<1x32x256xf32>
    %4 = vector.shape_cast %3 : vector<1x32x256xf32> to vector<32x256xf32>
    %c32 = arith.constant 32 : index
    %c0_7 = arith.constant 0 : index
    %5 = vector.load %arg8[%c32, %c0_7] : memref<64x256xf32, #tpu.memory_space<vmem>>, vector<32x256xf32>
    tpu.vector_store %arg8[%c32, %c0_7], %4 {strides = array<i32>} : memref<64x256xf32, #tpu.memory_space<vmem>>, vector<32x256xf32>,
    %c0_8 = arith.constant 0 : index
    %c0_9 = arith.constant 0 : index
    %c0_10 = arith.constant 0 : index
    %6 = vector.load %arg4[%c0_8, %c0_9, %c0_10] : memref<3x32x64xf32, #tpu.memory_space<vmem>>, vector<1x32x64xf32>
    %7 = vector.shape_cast %6 : vector<1x32x64xf32> to vector<32x64xf32>
    %c0_11 = arith.constant 0 : index
    %c0_12 = arith.constant 0 : index
    %8 = vector.load %arg8[%c0_11, %c0_12] : memref<64x256xf32, #tpu.memory_space<vmem>>, vector<64x256xf32>
    %cst = arith.constant dense<0.000000e+00> : vector<32x256xf32>
    %9 = tpu.matmul %7, %8, %cst {dimension_numbers = #tpu.dot_dimension_numbers<[1], [0], [0], [1], [0, 0, 1, 1], [], []>} : vector<32x64xf32>, vector<64x256xf32>, vector<32x256xf32> -> vector<32x256xf32>
    %c0_13 = arith.constant 0 : index
    %c0_14 = arith.constant 0 : index
    %c0_15 = arith.constant 0 : index
    %10 = vector.load %arg5[%c0_13, %c0_14, %c0_15] : memref<3x32x1xf32, #tpu.memory_space<vmem>>, vector<1x32x1xf32>
    %11 = vector.shape_cast %10 : vector<1x32x1xf32> to vector<32x1xf32>
    %12 = vector.broadcast %11 : vector<32x1xf32> to vector<32x256xf32>
    %13 = arith.addf %9, %12 : vector<32x256xf32>
    %cst_16 = arith.constant 0.000000e+00 : f32
    %14 = vector.broadcast %cst_16 : f32 to vector<32x256xf32>
    %15 = arith.maximumf %13, %14 : vector<32x256xf32>
    %c32_17 = arith.constant 32 : index
    %c0_18 = arith.constant 0 : index
    %16 = vector.load %arg8[%c32_17, %c0_18] : memref<64x256xf32, #tpu.memory_space<vmem>>, vector<32x256xf32>
    tpu.vector_store %arg8[%c32_17, %c0_18], %15 {strides = array<i32>} : memref<64x256xf32, #tpu.memory_space<vmem>>, vector<32x256xf32>,
    %c1 = arith.constant 1 : index
    %c0_19 = arith.constant 0 : index
    %c0_20 = arith.constant 0 : index
    %17 = vector.load %arg4[%c1, %c0_19, %c0_20] : memref<3x32x64xf32, #tpu.memory_space<vmem>>, vector<1x32x64xf32>
    %18 = vector.shape_cast %17 : vector<1x32x64xf32> to vector<32x64xf32>
    %c0_21 = arith.constant 0 : index
    %c0_22 = arith.constant 0 : index
    %19 = vector.load %arg8[%c0_21, %c0_22] : memref<64x256xf32, #tpu.memory_space<vmem>>, vector<64x256xf32>
    %cst_23 = arith.constant dense<0.000000e+00> : vector<32x256xf32>
    %20 = tpu.matmul %18, %19, %cst_23 {dimension_numbers = #tpu.dot_dimension_numbers<[1], [0], [0], [1], [0, 0, 1, 1], [], []>} : vector<32x64xf32>, vector<64x256xf32>, vector<32x256xf32> -> vector<32x256xf32>
    %c1_24 = arith.constant 1 : index
    %c0_25 = arith.constant 0 : index
    %c0_26 = arith.constant 0 : index
    %21 = vector.load %arg5[%c1_24, %c0_25, %c0_26] : memref<3x32x1xf32, #tpu.memory_space<vmem>>, vector<1x32x1xf32>
    %22 = vector.shape_cast %21 : vector<1x32x1xf32> to vector<32x1xf32>
    %23 = vector.broadcast %22 : vector<32x1xf32> to vector<32x256xf32>
    %24 = arith.addf %20, %23 : vector<32x256xf32>
    %cst_27 = arith.constant 0.000000e+00 : f32
    %25 = vector.broadcast %cst_27 : f32 to vector<32x256xf32>
    %26 = arith.maximumf %24, %25 : vector<32x256xf32>
    %c0_28 = arith.constant 0 : index
    %c0_29 = arith.constant 0 : index
    %27 = vector.load %arg8[%c0_28, %c0_29] : memref<64x256xf32, #tpu.memory_space<vmem>>, vector<32x256xf32>
    tpu.vector_store %arg8[%c0_28, %c0_29], %26 {strides = array<i32>} : memref<64x256xf32, #tpu.memory_space<vmem>>, vector<32x256xf32>,
    %c2 = arith.constant 2 : index
    %c0_30 = arith.constant 0 : index
    %c0_31 = arith.constant 0 : index
    %28 = vector.load %arg4[%c2, %c0_30, %c0_31] : memref<3x32x64xf32, #tpu.memory_space<vmem>>, vector<1x32x64xf32>
    %29 = vector.shape_cast %28 : vector<1x32x64xf32> to vector<32x64xf32>
    %c0_32 = arith.constant 0 : index
    %c0_33 = arith.constant 0 : index
    %30 = vector.load %arg8[%c0_32, %c0_33] : memref<64x256xf32, #tpu.memory_space<vmem>>, vector<64x256xf32>
    %cst_34 = arith.constant dense<0.000000e+00> : vector<32x256xf32>
    %31 = tpu.matmul %29, %30, %cst_34 {dimension_numbers = #tpu.dot_dimension_numbers<[1], [0], [0], [1], [0, 0, 1, 1], [], []>} : vector<32x64xf32>, vector<64x256xf32>, vector<32x256xf32> -> vector<32x256xf32>
    %c2_35 = arith.constant 2 : index
    %c0_36 = arith.constant 0 : index
    %c0_37 = arith.constant 0 : index
    %32 = vector.load %arg5[%c2_35, %c0_36, %c0_37] : memref<3x32x1xf32, #tpu.memory_space<vmem>>, vector<1x32x1xf32>
    %33 = vector.shape_cast %32 : vector<1x32x1xf32> to vector<32x1xf32>
    %34 = vector.broadcast %33 : vector<32x1xf32> to vector<32x256xf32>
    %35 = arith.addf %31, %34 : vector<32x256xf32>
    %cst_38 = arith.constant 0.000000e+00 : f32
    %36 = vector.broadcast %cst_38 : f32 to vector<32x256xf32>
    %37 = arith.maximumf %35, %36 : vector<32x256xf32>
    %c32_39 = arith.constant 32 : index
    %c0_40 = arith.constant 0 : index
    %38 = vector.load %arg8[%c32_39, %c0_40] : memref<64x256xf32, #tpu.memory_space<vmem>>, vector<32x256xf32>
    tpu.vector_store %arg8[%c32_39, %c0_40], %37 {strides = array<i32>} : memref<64x256xf32, #tpu.memory_space<vmem>>, vector<32x256xf32>,
    %c32_41 = arith.constant 32 : index
    %c0_42 = arith.constant 0 : index
    %39 = vector.load %arg8[%c32_41, %c0_42] : memref<64x256xf32, #tpu.memory_space<vmem>>, vector<32x256xf32>
    %c0_43 = arith.constant 0 : index
    %c0_44 = arith.constant 0 : index
    %c0_45 = arith.constant 0 : index
    %40 = vector.load %arg6[%c0_43, %c0_44, %c0_45] : memref<1x32x256xf32, #tpu.memory_space<vmem>>, vector<1x32x256xf32>
    %41 = vector.shape_cast %40 : vector<1x32x256xf32> to vector<32x256xf32>
    %42 = vector.shape_cast %39 : vector<32x256xf32> to vector<1x32x256xf32>
    tpu.vector_store %arg6[%c0_43, %c0_44, %c0_45], %42 {strides = array<i32>} : memref<1x32x256xf32, #tpu.memory_space<vmem>>, vector<1x32x256xf32>,
    %c0_46 = arith.constant 0 : index
    %c0_47 = arith.constant 0 : index
    %43 = vector.load %arg8[%c0_46, %c0_47] : memref<64x256xf32, #tpu.memory_space<vmem>>, vector<32x256xf32>
    %c0_48 = arith.constant 0 : index
    %c0_49 = arith.constant 0 : index
    %c0_50 = arith.constant 0 : index
    %44 = vector.load %arg7[%c0_48, %c0_49, %c0_50] : memref<1x32x256xf32, #tpu.memory_space<vmem>>, vector<1x32x256xf32>
    %45 = vector.shape_cast %44 : vector<1x32x256xf32> to vector<32x256xf32>
    %46 = vector.shape_cast %43 : vector<32x256xf32> to vector<1x32x256xf32>
    tpu.vector_store %arg7[%c0_48, %c0_49, %c0_50], %46 {strides = array<i32>} : memref<1x32x256xf32, #tpu.memory_space<vmem>>, vector<1x32x256xf32>,
    return
  }
  func.func @transform_0(%arg0: i32, %arg1: i32) -> (i32, i32, i32) {
    %c0_i32 = arith.constant 0 : i32
    %c0_i32_0 = arith.constant 0 : i32
    return %arg0, %c0_i32, %arg1 : i32, i32, i32
  }
  func.func @transform_1(%arg0: i32, %arg1: i32) -> (i32, i32, i32) {
    %c0_i32 = arith.constant 0 : i32
    %c0_i32_0 = arith.constant 0 : i32
    return %arg0, %c0_i32, %arg1 : i32, i32, i32
  }
  func.func @transform_2(%arg0: i32, %arg1: i32) -> (i32, i32, i32) {
    %c0_i32 = arith.constant 0 : i32
    %c0_i32_0 = arith.constant 0 : i32
    %c0_i32_1 = arith.constant 0 : i32
    %c0_i32_2 = arith.constant 0 : i32
    return %c0_i32, %c0_i32_0, %c0_i32_1 : i32, i32, i32
  }
  func.func @transform_3(%arg0: i32, %arg1: i32) -> (i32, i32, i32) {
    %c0_i32 = arith.constant 0 : i32
    %c0_i32_0 = arith.constant 0 : i32
    %c0_i32_1 = arith.constant 0 : i32
    %c0_i32_2 = arith.constant 0 : i32
    return %c0_i32, %c0_i32_0, %c0_i32_1 : i32, i32, i32
  }
  func.func @transform_4(%arg0: i32, %arg1: i32) -> (i32, i32, i32) {
    %c0_i32 = arith.constant 0 : i32
    %c0_i32_0 = arith.constant 0 : i32
    return %arg0, %c0_i32, %arg1 : i32, i32, i32
  }
  func.func @transform_5(%arg0: i32, %arg1: i32) -> (i32, i32, i32) {
    %c0_i32 = arith.constant 0 : i32
    %c0_i32_0 = arith.constant 0 : i32
    return %arg0, %c0_i32, %arg1 : i32, i32, i32
  }
}

</mosaic_0001>

<bundles_post_ra>
// kernel: tpu_custom_call.1
= control target key start
LH: loop header
LB: loop body
LE: loop exit
PB: predicated region body
PF: predicated region fallthrough
CT: control target
= control target key end

     0   :  { %s1798_s0 = inlined_call_operand.hbm [shape: f32[2,32,256], index: 0, kind: input, shape index: {}]   ;;  %s1799_s1 = inlined_call_operand.hbm [shape: f32[2,32,256], index: 1, kind: input, shape index: {}]   ;;  %s1800_s2 = inlined_call_operand.vmem [shape: f32[3,32,64], index: 2, kind: input, shape index: {}]   ;;  %s1801_s3 = inlined_call_operand.vmem [shape: f32[3,32,1], index: 3, kind: input, shape index: {}]   ;;  %s1802_s4 = inlined_call_operand.hbm [shape: f32[2,32,256], index: 4, kind: output, shape index: {0}]   ;;  %s1803_s5 = inlined_call_operand.hbm [shape: f32[2,32,256], index: 5, kind: output, shape index: {1}]  }
   0x1   :  { %1805 = sst [smem:[#allocation17_spill]] %s1798_s0 }
   0x2   :  { %11 = vsyncpa [#allocation4], 0 }
   0x3   :  { %13 = vsyncpa [#allocation4 + $0x1], 0 }
   0x4   :  { %14 = vsyncpa [#allocation7], 0 }
   0x5   :  { %16 = vsyncpa [#allocation7 + $0x1], 0 }
   0x6   :  { %17 = vsyncpa [#allocation5], 0 }
   0x7   :  { %19 = vsyncpa [#allocation5 + $0x1], 0 }
   0x8   :  { %20 = vsyncpa [#allocation10], 0 }
   0x9   :  { %22 = vsyncpa [#allocation10 + $0x1], 0  ;;  %s1424_s18 = smov 0   ;;  %s1426_s19 = smov 0  }
   0xa   :  { %s1428_s20 = smov 0   ;;  %s1430_s21 = smov 0  }
   0xb   :  { %s1432_s22 = smov 0   ;;  %s1434_s23 = smov 0  }
   0xc LB: > { %s1061_s24 = sadd.s32 4294967295, %s1382_s23   ;;  %s1062_s25 = sadd.s32 4294967294, %s1382_s23   ;;  %s1382_s23 = sphi %s1434_s23, %s28_s23   ;;  %s1378_s22 = sphi %s1432_s22, %s1821_s22   ;;  %s1374_s21 = sphi %s1430_s21, %s1820_s21   ;;  %s1370_s20 = sphi %s1428_s20, %s1819_s20   ;;  %s1366_s19 = sphi %s1426_s19, %s1818_s19   ;;  %s1362_s18 = sphi %s1424_s18, %s1817_s18  }
   0xd   : > { %s40_s26 = sadd.s32 1, %s1378_s22  ;;  %s49_s27 = sadd.s32 1, %s1370_s20 }
   0xe   : > { %p42_p0 = scmp.ge.s32.totalorder %s40_s26, 2  ;;  %p56_p1 = scmp.ne.s32.totalorder %s1370_s20, %s1366_s19 }
   0xf   : > { %p57_p2 = scmp.eq.s32.totalorder %s1382_s23, 0  ;;  %p62_p3 = scmp.ne.s32.totalorder %s1366_s19, %s1362_s18 }
  0x10   : > { %s1823_s26 = smov (%p42_p0, %s40_s26), 0  ;;  %p63_p5 = scmp.eq.s32.totalorder %s1061_s24, 0 }
  0x11   : > { %1806 = sst [smem:[#allocation15_spill]] %s1823_s26  ;;  %p1465_p4 = por %p57_p2, %p56_p1 }
  0x12   : > { %s44_s29 = ssub.s32 %s1378_s22, %s1823_s26  ;;  %p158_p6 = scmp.eq.s32.totalorder %s1061_s24, 1 }
  0x13   : > { %p47_p7 = scmp.eq.s32.totalorder %s44_s29, 0  ;;  %p1471_p8 = por %p63_p5, %p62_p3 }
  0x14   : > { %p1475_p9 = por %p158_p6, %p56_p1  ;;  %p164_p10 = scmp.eq.s32.totalorder %s1062_s25, 1 }
  0x15   : > { %s1480_s7 = scalar_select %p47_p7, %s1370_s20, %s49_s27  }
  0x16   : > { %p1482_p11 = por %p164_p10, %p62_p3  ;;  %p1064_p12 = scmp.ge.s32.totalorder %s1382_s23, 2 }
  0x17   : > { %1810 = sst [smem:[#allocation16_spill]] %s1480_s7  ;;  %p1154_p13 = scmp.lt.s32.totalorder %s1382_s23, 2 }
  0x18   : > { %s1489_s9 = sand.u32 1, %s1370_s20   ;;  %s1112_s11 = sshll.u32 %s1378_s22, 10 }
  0x19   : > { %s1065_s10 = sshll.u32 %s1489_s9, 6  ;;  %s1812_s0 = sld [smem:[#allocation17_spill]] }
  0x1a   : > { %s222_s15 = scalar_lea.vmem [#allocation3], %s1065_s10  ;;  %p1502_p0 = pnand %p1154_p13, %p1465_p4 }
  0x1b   : > { %s231_s16 = sshll.u32 %s222_s15, 4  ;;  %p1071_p1 = scmp.ge.s32.totalorder %s1382_s23, 1  ;;  %s232_s16 = int_to_ptr.vmem [resolvable:$true] %s231_s16 }
  0x1c   : > { %s219_s24 = scalar_lea.sflag [#allocation4], %s1489_s9  ;;  %p1214_p2 = pneg %p1502_p0 }
  0x1d   : > { %s1225_s25 = scalar_lea.vmem %s232_s16, 1024  ;;  %s1384_s27 = smov [#allocation3]  }
  0x1e   : > { %p1226_p3 = scmp.ne.s32.totalorder %s232_s16, %s1225_s25  ;;  %s1230_s29 = sshll.u32 %s1384_s27, 4  ;;  %s1231_s29 = int_to_ptr.vmem [resolvable:$false] %s1230_s29 }
  0x1f   : > { %s230_s14 = scalar_lea.hbm %s1812_s0, %s1112_s11  ;;  %s1232_s28 = scalar_lea.vmem %s1231_s29, 2048 }
  0x20   : > { %p1228_p5 = pnand %p1226_p3, %p1214_p2  ;;  %p1233_p4 = scmp.lt.s32.totalorder %s232_s16, %s1231_s29 }
  0x21   : > { %p1234_p7 = scmp.lt.s32.totalorder %s1232_s28, %s1225_s25 }
  0x22   : > { %p1229_p6 = pneg %p1228_p5 }
  0x23   : > { %p1235_p10 = por %p1234_p7, %p1233_p4 }
  0x25   : > { %p1236_p13 = pnand %p1235_p10, %p1229_p6 }
  0x27   : > { %1239 = shalt.err (!%p1236_p13)
}
  0x28   : > { %s1385_s12 = smov 256   ;;  %s1386_s13 = smov 16  }
  0x29   : > { %1143 = dma.hbm_to_vmem [thread:$0]  (!%p1502_p0), %s230_s14, 1024, %s232_s16, %s219_s24, %s1385_s12, %s1385_s12, %s1386_s13  }
  0x2a   : > { %p262_p3 = scmp.lt.s32.totalorder %s1382_s23, 3  ;;  %s253_s25 = scalar_lea.hbm %s1799_s1, %s1112_s11 }
  0x2b   : > { %s245_s28 = scalar_lea.vmem [#allocation6], %s1065_s10  ;;  %s242_s26 = scalar_lea.sflag [#allocation7], %s1489_s9 }
  0x2c   : > { %p1523_p5 = pnand %p1071_p1, %p262_p3  ;;  %s254_s0 = sshll.u32 %s245_s28, 4  ;;  %s255_s0 = int_to_ptr.vmem [resolvable:$true] %s254_s0 }
  0x2d   : > { %s1253_s7 = scalar_lea.vmem %s255_s0, 1024  ;;  %s1387_s14 = smov [#allocation6]  }
  0x2e   : > { %p1254_p6 = scmp.ne.s32.totalorder %s255_s0, %s1253_s7  ;;  %s1258_s16 = sshll.u32 %s1387_s14, 4  ;;  %s1259_s16 = int_to_ptr.vmem [resolvable:$false] %s1258_s16 }
  0x2f   : > { %s1260_s11 = scalar_lea.vmem %s1259_s16, 2048  ;;  %p1261_p10 = scmp.lt.s32.totalorder %s255_s0, %s1259_s16 }
  0x30   : > { %p1256_p4 = pnand %p1254_p6, %p1214_p2  ;;  %p1262_p1 = scmp.lt.s32.totalorder %s1260_s11, %s1253_s7 }
  0x32   : > { %p1257_p7 = pneg %p1256_p4  ;;  %p1263_p13 = por %p1262_p1, %p1261_p10 }
  0x34   : > { %p1264_p3 = pnand %p1263_p13, %p1257_p7 }
  0x36   : > { %1267 = shalt.err (!%p1264_p3)
}
  0x37   : > { %1146 = dma.hbm_to_vmem [thread:$0]  (!%p1502_p0), %s253_s25, 1024, %s255_s0, %s242_s26, %s1385_s12, %s1385_s12, %s1386_s13  }
  0x38   : > { %266 = sbr.rel (%p1523_p5) target bundleno = 745 (0x2e9), region = 36  ;;  %s1538_s9 = sand.u32 (!%p1523_p5), 1, %s1366_s19  }
  0x39   : > { %s1541_s10 = sshll.u32 (!%p1523_p5), %s1538_s9, 6  ;;  %s269_s24 = scalar_lea.sflag (!%p1523_p5), [#allocation4], %s1538_s9 }
  0x3a   : > { %s1545_s7 = scalar_lea.vmem (!%p1523_p5), [#allocation3], %s1541_s10 }
  0x3d   : > { %1345 = dma.done.wait (%p1471_p8), %s269_s24, 1024  }
  0x3e   : > { %1347 = vsyncadd (%p1471_p8), %s269_s24, 4294966272  ;;  %s278_s0 = scalar_lea.sflag [#allocation7], %s1538_s9  ;;  %s281_s26 = scalar_lea.vmem [#allocation6], %s1541_s10 }
  0x3f   : > { %1349 = dma.done.wait (%p1471_p8), %s278_s0, 1024  }
  0x40   : > { %1351 = vsyncadd (%p1471_p8), %s278_s0, 4294966272  ;;  %v1388_v0 = vmov 0.0   ;;  %v1389_v1 = vmov 0   ;;  %v345_v2 = vld [vmem:[%s281_s26 + $0x38] sm:$0xff]  ;;  %v344_v3 = vld [vmem:[%s281_s26 + $0x30] sm:$0xff]  ;;  %vm398_vm0 = vcmask 523264  }
  0x41   : > { %475 = vmatprep.mubr.f32.mxu0 %v1388_v0  ;;  %1210 = vset.pattern.permute.xlu0 %v1389_v1  ;;  %v343_v4 = vld [vmem:[%s281_s26 + $0x28] sm:$0xff]  ;;  %v342_v5 = vld [vmem:[%s281_s26 + $0x20] sm:$0xff]  ;;  %v341_v6 = vld [vmem:[%s281_s26 + $0x18] sm:$0xff]  ;;  %s1676_s28 = scalar_lea.vmem [#allocation9], %s1541_s10  ;;  %s1114_s12 = sshll.u32 %s1374_s21, 10 }
  0x42   : > { %1211 = vset.pattern.permute.xlu1 %v1389_v1  ;;  %638 = vmatprep.mubr.f32.mxu1 %v1388_v0  ;;  %v340_v7 = vld [vmem:[%s281_s26 + $0x10] sm:$0xff]  ;;  %v339_v8 = vld [vmem:[%s281_s26 + $0x8] sm:$0xff]  ;;  %v338_v9 = vld [vmem:[%s281_s26] sm:$0xff]  ;;  %s913_s17 = sshll.u32 %s1676_s28, 4  ;;  %s1713_s27 = scalar_lea.hbm %s1803_s5, %s1114_s12  ;;  %s1706_s17 = int_to_ptr.vmem [resolvable:$true] %s913_s17 }
  0x43   : > { %427 = vmatprep.subr.mxu0 %v345_v2  ;;  %v1560_v10 = vld [vmem:[%s1545_s7 + $0x38] sm:$0xff]  ;;  %v1566_v12 = vld [vmem:[%s1545_s7 + $0x30] sm:$0xff]  ;;  %v375_v13 = vld [vmem:[%s1801_s3 + $0x8] sm:$0xff]  ;;  %s880_s25 = scalar_lea.sflag [#allocation10], %s1538_s9  ;;  %s1268_s29 = scalar_lea.vmem %s1706_s17, 1024 }
  0x44   : > { %428 = vmatpush1.msra.mxu0 %v344_v3  ;;  %v377_v11 = vld [vmem:[%s1801_s3 + $0x18] sm:$0xff]  ;;  %v1572_v14 = vld [vmem:[%s1545_s7 + $0x28] sm:$0xff]  ;;  %v376_v15 = vld [vmem:[%s1801_s3 + $0x10] sm:$0xff]  ;;  %385 = vperm.xlu1 %1211, %v375_v13   ;;  %p1269_p8 = scmp.ne.s32.totalorder %s1706_s17, %s1268_s29  ;;  %s1390_s14 = smov [#allocation9]  }
  0x45   : > { %429 = vmatprep.subr.mxu0 %v343_v4  ;;  %395 = vperm.xlu0 %1210, %v377_v11   ;;  %v1579_v16 = vld [vmem:[%s1545_s7 + $0x20] sm:$0xff]  ;;  %v1586_v18 = vld [vmem:[%s1545_s7 + $0x18] sm:$0xff]  ;;  %v1590_v19 = vld [vmem:[%s1545_s7 + $0x10] sm:$0xff] }
  0x46   : > { %430 = vmatpush1.msra.mxu0 %v342_v5  ;;  %v374_v17 = vld [vmem:[%s1801_s3] sm:$0xff]  ;;  %v1594_v20 = vld [vmem:[%s1545_s7 + $0x8] sm:$0xff]  ;;  %v1087_v21 = vld [vmem:[%s1801_s3 + $0x38] sm:$0xff]  ;;  %p1270_p0 = pnand %p1269_p8, %p1475_p9 }
  0x47   : > { %431 = vmatprep.subr.mxu0 %v341_v6  ;;  %v1601_v22 = vld [vmem:[%s1545_s7] sm:$0xff]  ;;  %v1086_v23 = vld [vmem:[%s1801_s3 + $0x30] sm:$0xff]  ;;  %v1085_v25 = vld [vmem:[%s1801_s3 + $0x28] sm:$0xff] }
  0x48   : > { %432 = vmatpush1.msra.mxu0 %v340_v7  ;;  %380 = vperm.xlu1 %1211, %v374_v17   ;;  %v354_v24 = vld [vmem:[%s1800_s2] sm:$0xff]  ;;  %v355_v27 = vld [vmem:[%s1800_s2 + $0x8] sm:$0xff]  ;;  %v356_v30 = vld [vmem:[%s1800_s2 + $0x10] sm:$0xff]  ;;  %p1271_p2 = pneg %p1270_p0 }
  0x49   : > { %433 = vmatprep.subr.mxu0 %v339_v8  ;;  %390 = vperm.xlu0 %1210, %v376_v15   ;;  %v1084_v26 = vld [vmem:[%s1801_s3 + $0x20] sm:$0xff]  ;;  %v1097_v29 = vld [vmem:[%s1801_s3 + $0x48] sm:$0xff]  ;;  %v1098_v31 = vld [vmem:[%s1801_s3 + $0x50] sm:$0xff] }
  0x4a   : > { %434 = vmatpush1.msra.mxu0 %v338_v9  ;;  %v1096_v28 = vld [vmem:[%s1801_s3 + $0x40] sm:$0xff]  ;;  %v1099_v32 = vld [vmem:[%s1801_s3 + $0x58] sm:$0xff]  ;;  %v1081_v63 = vld [vmem:[%s1800_s2 + $0x28] sm:$0xff] }
  0x4b   : > { %435 = vmatprep.subr.mxu0 %v1560_v10  ;;  %v357_v33 = vld [vmem:[%s1800_s2 + $0x18] sm:$0xff]  ;;  %v1080_v62 = vld [vmem:[%s1800_s2 + $0x20] sm:$0xff]  ;;  %v1082_v1 = vld [vmem:[%s1800_s2 + $0x30] sm:$0xff] }
  0x4c   : > { %436 = vmatpush1.msra.mxu0 %v1566_v12  ;;  %554 = vperm.xlu1 %1211, %v1086_v23   ;;  %v1083_v2 = vld [vmem:[%s1800_s2 + $0x38] sm:$0xff] }
  0x4d   : > { %437 = vmatprep.subr.mxu0 %v1572_v14  ;;  %559 = vperm.xlu0 %1210, %v1087_v21  }
  0x4e   : > { %438 = vmatpush1.msra.mxu0 %v1579_v16 }
  0x4f   : > { %439 = vmatprep.subr.mxu0 %v1586_v18 }
  0x50   : > { %440 = vmatpush1.msra.mxu0 %v1590_v19  ;;  %544 = vperm.xlu1 %1211, %v1084_v26  }
  0x51   : > { %441 = vmatprep.subr.mxu0 %v1594_v20  ;;  %549 = vperm.xlu0 %1210, %v1085_v25  }
  0x52   : > { %442 = vmatpush1.msra.mxu0 %v1601_v22 }
  0x53   : > { %1076 = vmatmul.mubr.msk.f32.vlgmr.msra.gmra.mxu0 %vm398_vm0, %v354_v24 }
  0x54   : > { %481 = vmatprep.mubr.f32.mxu0 %v1388_v0  ;;  %712 = vperm.xlu1 %1211, %v1097_v29  }
  0x55   : > { %707 = vperm.xlu0 %1210, %v1096_v28  }
  0x57   : > { %1077 = vmatmul.mubr.msk.f32.gmra.mxu0 %vm398_vm0, %v355_v27 }
  0x58   : > { %487 = vmatprep.mubr.f32.mxu0 %v1388_v0  ;;  %722 = vperm.xlu1 %1211, %v1099_v32   ;;  %v1094_v32 = vld [vmem:[%s1800_s2 + $0x50] sm:$0xff] }
  0x59   : > { %717 = vperm.xlu0 %1210, %v1098_v31   ;;  %v1092_v31 = vld [vmem:[%s1800_s2 + $0x40] sm:$0xff] }
  0x5b   : > { %1078 = vmatmul.mubr.msk.f32.gmra.mxu0 %vm398_vm0, %v356_v30 }
  0x5c   : > { %493 = vmatprep.mubr.f32.mxu0 %v1388_v0 }
  0x5f   : > { %1079 = vmatmul.mubr.msk.f32.gmra.mxu0 %vm398_vm0, %v357_v33  ;;  %v1093_v33 = vld [vmem:[%s1800_s2 + $0x48] sm:$0xff] }
  0x60   : > { %801 = vmatprep.mubr.f32.mxu0 %v1388_v0 }
  0xbf   : > { %v386_v41 = vpop.permute.xlu1 %385 }
  0xc0   : > { %v396_v38 = vpop.permute.xlu0 %395 }
  0xc3   : > { %v381_v49 = vpop.permute.xlu1 %380 }
  0xc4   : > { %v391_v43 = vpop.permute.xlu0 %390 }
  0xc7   : > { %v555_v3 = vpop.permute.xlu1 %554 }
  0xc8   : > { %v560_v4 = vpop.permute.xlu0 %559 }
  0xcb   : > { %v545_v5 = vpop.permute.xlu1 %544 }
  0xcc   : > { %v550_v11 = vpop.permute.xlu0 %549 }
 0x113   : > { %v477_v34 = vpop.f32.mrf.mxu0 }
 0x114   : > { %v478_v56 = vadd.f32 %v477_v34, %v381_v49  ;;  %v1095_v34 = vld [vmem:[%s1800_s2 + $0x58] sm:$0xff] }
 0x115   : > { %v479_v35 = vpop.f32.mrf.mxu0 }
 0x116   : > { %v480_v54 = vadd.f32 %v479_v35, %v381_v49  ;;  %v500_v61 = vmax.f32 %v478_v56, 0.0 }
 0x117   : > { %v483_v36 = vpop.f32.mrf.mxu0 }
 0x118   : > { %v484_v52 = vadd.f32 %v483_v36, %v386_v41  ;;  %v501_v60 = vmax.f32 %v480_v54, 0.0 }
 0x119   : > { %v485_v37 = vpop.f32.mrf.mxu0 }
 0x11a   : > { %v486_v50 = vadd.f32 %v485_v37, %v386_v41  ;;  %v502_v59 = vmax.f32 %v484_v52, 0.0 }
 0x11b   : > { %v489_v39 = vpop.f32.mrf.mxu0 }
 0x11c   : > { %v490_v48 = vadd.f32 %v489_v39, %v391_v43  ;;  %v503_v58 = vmax.f32 %v486_v50, 0.0 }
 0x11d   : > { %v491_v40 = vpop.f32.mrf.mxu0 }
 0x11e   : > { %v492_v46 = vadd.f32 %v491_v40, %v391_v43  ;;  %v504_v57 = vmax.f32 %v490_v48, 0.0 }
 0x11f   : > { %v495_v42 = vpop.f32.mrf.mxu0 }
 0x120   : > { %v496_v44 = vadd.f32 %v495_v42, %v396_v38  ;;  %v505_v55 = vmax.f32 %v492_v46, 0.0 }
 0x121   : > { %v497_v45 = vpop.f32.mrf.mxu0 }
 0x122   : > { %v498_v47 = vadd.f32 %v497_v45, %v396_v38  ;;  %v506_v53 = vmax.f32 %v496_v44, 0.0 }
 0x124   : > { %v507_v51 = vmax.f32 %v498_v47, 0.0 }
 0x126   : > { %590 = vmatprep.subr.mxu1 %v507_v51  ;;  %753 = vmatprep.subr.mxu0 %v507_v51 }
 0x127   : > { %591 = vmatpush1.msra.mxu1 %v506_v53  ;;  %754 = vmatpush1.msra.mxu0 %v506_v53 }
 0x128   : > { %592 = vmatprep.subr.mxu1 %v505_v55  ;;  %755 = vmatprep.subr.mxu0 %v505_v55 }
 0x129   : > { %593 = vmatpush1.msra.mxu1 %v504_v57  ;;  %756 = vmatpush1.msra.mxu0 %v504_v57 }
 0x12a   : > { %594 = vmatprep.subr.mxu1 %v503_v58  ;;  %757 = vmatprep.subr.mxu0 %v503_v58 }
 0x12b   : > { %595 = vmatpush1.msra.mxu1 %v502_v59  ;;  %758 = vmatpush1.msra.mxu0 %v502_v59 }
 0x12c   : > { %596 = vmatprep.subr.mxu1 %v501_v60  ;;  %759 = vmatprep.subr.mxu0 %v501_v60 }
 0x12d   : > { %597 = vmatpush1.msra.mxu1 %v500_v61  ;;  %760 = vmatpush1.msra.mxu0 %v500_v61 }
 0x12e   : > { %598 = vmatprep.subr.mxu1 %v1560_v10 }
 0x12f   : > { %599 = vmatpush1.msra.mxu1 %v1566_v12 }
 0x130   : > { %600 = vmatprep.subr.mxu1 %v1572_v14 }
 0x131   : > { %601 = vmatpush1.msra.mxu1 %v1579_v16 }
 0x132   : > { %602 = vmatprep.subr.mxu1 %v1586_v18 }
 0x133   : > { %603 = vmatpush1.msra.mxu1 %v1590_v19 }
 0x134   : > { %604 = vmatprep.subr.mxu1 %v1594_v20 }
 0x135   : > { %605 = vmatpush1.msra.mxu1 %v1601_v22 }
 0x136   : > { %1088 = vmatmul.mubr.msk.f32.vlgmr.msra.gmra.mxu1 %vm398_vm0, %v1080_v62  ;;  %1116 = vmatprep.subr.mxu1 %v507_v51 }
 0x137   : > { %1124 = vmatpush1.msra.mxu1 %v506_v53  ;;  %644 = vmatprep.mubr.f32.mxu1 %v1388_v0 }
 0x138   : > { %1117 = vmatprep.subr.mxu1 %v505_v55 }
 0x139   : > { %1125 = vmatpush1.msra.mxu1 %v504_v57 }
 0x13a   : > { %1089 = vmatmul.mubr.msk.f32.gmra.mxu1 %vm398_vm0, %v1081_v63  ;;  %1118 = vmatprep.subr.mxu1 %v503_v58 }
 0x13b   : > { %1126 = vmatpush1.msra.mxu1 %v502_v59  ;;  %650 = vmatprep.mubr.f32.mxu1 %v1388_v0 }
 0x13c   : > { %1119 = vmatprep.subr.mxu1 %v501_v60 }
 0x13d   : > { %1127 = vmatpush1.msra.mxu1 %v500_v61 }
 0x13e   : > { %1090 = vmatmul.mubr.msk.f32.gmra.mxu1 %vm398_vm0, %v1082_v1 }
 0x13f   : > { %656 = vmatprep.mubr.f32.mxu1 %v1388_v0 }
 0x142   : > { %1091 = vmatmul.mubr.msk.f32.gmra.mxu1 %vm398_vm0, %v1083_v2 }
 0x143   : > { %813 = vmatprep.mubr.f32.mxu1 %v1388_v0 }
 0x1f6   : > { %v640_v6 = vpop.f32.mrf.mxu1 }
 0x1f7   : > { %v641_v7 = vadd.f32 %v640_v6, %v545_v5 }
 0x1f8   : > { %v642_v8 = vpop.f32.mrf.mxu1 }
 0x1f9   : > { %v663_v9 = vmax.f32 %v641_v7, 0.0  ;;  %v643_v10 = vadd.f32 %v642_v8, %v545_v5 }
 0x1fa   : > { %v646_v12 = vpop.f32.mrf.mxu1 }
 0x1fb   : > { %866 = vst [vmem:[%s1676_s28] sm:$0xff] %v663_v9  ;;  %v664_v13 = vmax.f32 %v643_v10, 0.0  ;;  %v647_v14 = vadd.f32 %v646_v12, %v550_v11 }
 0x1fc   : > { %v648_v15 = vpop.f32.mrf.mxu1 }
 0x1fd   : > { %867 = vst [vmem:[%s1676_s28 + $0x8] sm:$0xff] %v664_v13  ;;  %v665_v16 = vmax.f32 %v647_v14, 0.0  ;;  %v649_v17 = vadd.f32 %v648_v15, %v550_v11 }
 0x1fe   : > { %v652_v18 = vpop.f32.mrf.mxu1 }
 0x1ff   : > { %868 = vst [vmem:[%s1676_s28 + $0x10] sm:$0xff] %v665_v16  ;;  %v666_v19 = vmax.f32 %v649_v17, 0.0  ;;  %v653_v20 = vadd.f32 %v652_v18, %v555_v3 }
 0x200   : > { %v654_v21 = vpop.f32.mrf.mxu1 }
 0x201   : > { %869 = vst [vmem:[%s1676_s28 + $0x18] sm:$0xff] %v666_v19  ;;  %v667_v22 = vmax.f32 %v653_v20, 0.0  ;;  %v655_v23 = vadd.f32 %v654_v21, %v555_v3 }
 0x202   : > { %v658_v24 = vpop.f32.mrf.mxu1 }
 0x203   : > { %870 = vst [vmem:[%s1676_s28 + $0x20] sm:$0xff] %v667_v22  ;;  %v668_v25 = vmax.f32 %v655_v23, 0.0  ;;  %v659_v26 = vadd.f32 %v658_v24, %v560_v4 }
 0x204   : > { %v660_v27 = vpop.f32.mrf.mxu1 }
 0x205   : > { %871 = vst [vmem:[%s1676_s28 + $0x28] sm:$0xff] %v668_v25  ;;  %v669_v28 = vmax.f32 %v659_v26, 0.0  ;;  %v661_v29 = vadd.f32 %v660_v27, %v560_v4 }
 0x207   : > { %872 = vst [vmem:[%s1676_s28 + $0x30] sm:$0xff] %v669_v28  ;;  %v670_v30 = vmax.f32 %v661_v29, 0.0 }
 0x209   : > { %873 = vst [vmem:[%s1676_s28 + $0x38] sm:$0xff] %v670_v30  ;;  %761 = vmatprep.subr.mxu0 %v670_v30  ;;  %1120 = vmatprep.subr.mxu1 %v670_v30  ;;  %s1272_s28 = sshll.u32 %s1390_s14, 4  ;;  %s1273_s28 = int_to_ptr.vmem [resolvable:$false] %s1272_s28 }
 0x20a   : > { %762 = vmatpush1.msra.mxu0 %v669_v28  ;;  %1128 = vmatpush1.msra.mxu1 %v669_v28  ;;  %s1274_s16 = scalar_lea.vmem %s1273_s28, 2048  ;;  %p1275_p5 = scmp.lt.s32.totalorder %s1706_s17, %s1273_s28 }
 0x20b   : > { %763 = vmatprep.subr.mxu0 %v668_v25  ;;  %1121 = vmatprep.subr.mxu1 %v668_v25  ;;  %p1276_p6 = scmp.lt.s32.totalorder %s1274_s16, %s1268_s29 }
 0x20c   : > { %764 = vmatpush1.msra.mxu0 %v667_v22  ;;  %1129 = vmatpush1.msra.mxu1 %v667_v22 }
 0x20d   : > { %765 = vmatprep.subr.mxu0 %v666_v19  ;;  %1122 = vmatprep.subr.mxu1 %v666_v19  ;;  %p1277_p4 = por %p1276_p6, %p1275_p5 }
 0x20e   : > { %766 = vmatpush1.msra.mxu0 %v665_v16  ;;  %1130 = vmatpush1.msra.mxu1 %v665_v16 }
 0x20f   : > { %767 = vmatprep.subr.mxu0 %v664_v13  ;;  %1123 = vmatprep.subr.mxu1 %v664_v13  ;;  %p1278_p7 = pnand %p1277_p4, %p1271_p2 }
 0x210   : > { %768 = vmatpush1.msra.mxu0 %v663_v9  ;;  %1131 = vmatpush1.msra.mxu1 %v663_v9 }
 0x211   : > { %1100 = vmatmul.mubr.msk.f32.vlgmr.msra.gmra.mxu0 %vm398_vm0, %v1092_v31  ;;  %1102 = vmatmul.mubr.msk.f32.vlgmr.msra.gmra.mxu1 %vm398_vm0, %v1094_v32 }
 0x212   : > { %807 = vmatprep.mubr.f32.mxu0 %v1388_v0  ;;  %819 = vmatprep.mubr.f32.mxu1 %v1388_v0 }
 0x215   : > { %1101 = vmatmul.mubr.msk.f32.gmra.mxu0 %vm398_vm0, %v1093_v33  ;;  %1103 = vmatmul.mubr.msk.f32.gmra.mxu1 %vm398_vm0, %v1095_v34 }
 0x216   : > { %1281 = shalt.err (!%p1278_p7)
}
 0x217   : > { %s1282_s11 = scalar_lea.hbm %s1713_s27, 1024  ;;  %s1286_s26 = scalar_lea.hbm %s1803_s5, 2048 }
 0x218   : > { %p1283_p10 = scmp.ne.s32.totalorder %s1713_s27, %s1282_s11  ;;  %p1287_p3 = scmp.lt.s32.totalorder %s1713_s27, %s1803_s5 }
 0x219   : > { %p1288_p8 = scmp.lt.s32.totalorder %s1286_s26, %s1282_s11 }
 0x21a   : > { %p1284_p1 = pnand %p1283_p10, %p1475_p9 }
 0x21b   : > { %p1289_p0 = por %p1288_p8, %p1287_p3 }
 0x21c   : > { %p1285_p13 = pneg %p1284_p1 }
 0x21e   : > { %p1290_p2 = pnand %p1289_p0, %p1285_p13 }
 0x220   : > { %1293 = shalt.err (!%p1290_p2)
}
 0x221   : > { %s1391_s13 = smov 256   ;;  %s1392_s15 = smov 16   ;;  %v708_v0 = vpop.permute.xlu0 %707  ;;  %v713_v35 = vpop.permute.xlu1 %712 }
 0x222   : > { %1137 = dma.vmem_to_hbm [thread:$0]  (%p1475_p9), %s1706_s17, 1024, %s1713_s27, %s880_s25, %s1391_s13, %s1391_s13, %s1392_s15  }
 0x223   : > { %s310_s29 = scalar_lea.vmem [#allocation8], %s1541_s10  ;;  %s1749_s25 = scalar_lea.hbm %s1802_s4, %s1114_s12 }
 0x224   : > { %s895_s17 = sshll.u32 %s310_s29, 4  ;;  %s875_s14 = scalar_lea.sflag [#allocation5], %s1538_s9  ;;  %s1742_s17 = int_to_ptr.vmem [resolvable:$true] %s895_s17 }
 0x225   : > { %v718_v36 = vpop.permute.xlu0 %717  ;;  %v723_v43 = vpop.permute.xlu1 %722  ;;  %s1294_s28 = scalar_lea.vmem %s1742_s17, 1024  ;;  %s1393_s16 = smov [#allocation8]  }
 0x226   : > { %p1295_p5 = scmp.ne.s32.totalorder %s1742_s17, %s1294_s28  ;;  %s1298_s11 = sshll.u32 %s1393_s16, 4  ;;  %s1299_s11 = int_to_ptr.vmem [resolvable:$false] %s1298_s11 }
 0x227   : > { %s1300_s24 = scalar_lea.vmem %s1299_s11, 2048  ;;  %p1301_p7 = scmp.lt.s32.totalorder %s1742_s17, %s1299_s11 }
 0x228   : > { %p1296_p6 = pnand %p1295_p5, %p1475_p9  ;;  %p1302_p10 = scmp.lt.s32.totalorder %s1300_s24, %s1294_s28 }
 0x22a   : > { %p1297_p4 = pneg %p1296_p6  ;;  %p1303_p1 = por %p1302_p10, %p1301_p7 }
 0x22c   : > { %p1304_p13 = pnand %p1303_p1, %p1297_p4 }
 0x2d1   : > { %v803_v37 = vpop.f32.mrf.mxu0  ;;  %v815_v38 = vpop.f32.mrf.mxu1 }
 0x2d2   : > { %v804_v39 = vadd.f32 %v803_v37, %v708_v0  ;;  %v816_v40 = vadd.f32 %v815_v38, %v718_v36 }
 0x2d3   : > { %v805_v41 = vpop.f32.mrf.mxu0  ;;  %v817_v42 = vpop.f32.mrf.mxu1 }
 0x2d4   : > { %v826_v44 = vmax.f32 %v804_v39, 0.0  ;;  %v830_v45 = vmax.f32 %v816_v40, 0.0  ;;  %v806_v46 = vadd.f32 %v805_v41, %v708_v0  ;;  %v818_v47 = vadd.f32 %v817_v42, %v718_v36 }
 0x2d5   : > { %v809_v48 = vpop.f32.mrf.mxu0  ;;  %v821_v49 = vpop.f32.mrf.mxu1 }
 0x2d6   : > { %850 = vst [vmem:[%s310_s29] sm:$0xff] %v826_v44  ;;  %854 = vst [vmem:[%s310_s29 + $0x20] sm:$0xff] %v830_v45  ;;  %v827_v50 = vmax.f32 %v806_v46, 0.0  ;;  %v831_v51 = vmax.f32 %v818_v47, 0.0  ;;  %v810_v52 = vadd.f32 %v809_v48, %v713_v35  ;;  %v822_v53 = vadd.f32 %v821_v49, %v723_v43 }
 0x2d7   : > { %v811_v54 = vpop.f32.mrf.mxu0  ;;  %v823_v55 = vpop.f32.mrf.mxu1 }
 0x2d8   : > { %851 = vst [vmem:[%s310_s29 + $0x8] sm:$0xff] %v827_v50  ;;  %855 = vst [vmem:[%s310_s29 + $0x28] sm:$0xff] %v831_v51  ;;  %v828_v56 = vmax.f32 %v810_v52, 0.0  ;;  %v832_v57 = vmax.f32 %v822_v53, 0.0  ;;  %v812_v58 = vadd.f32 %v811_v54, %v713_v35  ;;  %v824_v59 = vadd.f32 %v823_v55, %v723_v43 }
 0x2da   : > { %852 = vst [vmem:[%s310_s29 + $0x10] sm:$0xff] %v828_v56  ;;  %856 = vst [vmem:[%s310_s29 + $0x30] sm:$0xff] %v832_v57  ;;  %v829_v60 = vmax.f32 %v812_v58, 0.0  ;;  %v833_v61 = vmax.f32 %v824_v59, 0.0 }
 0x2dc   : > { %853 = vst [vmem:[%s310_s29 + $0x18] sm:$0xff] %v829_v60  ;;  %857 = vst [vmem:[%s310_s29 + $0x38] sm:$0xff] %v833_v61 }
 0x2dd   : > { %1307 = shalt.err (!%p1304_p13)
}
 0x2de   : > { %s1308_s21 = scalar_lea.hbm %s1749_s25, 1024  ;;  %s1312_s0 = scalar_lea.hbm %s1802_s4, 2048 }
 0x2df   : > { %p1309_p3 = scmp.ne.s32.totalorder %s1749_s25, %s1308_s21  ;;  %p1313_p2 = scmp.lt.s32.totalorder %s1749_s25, %s1802_s4 }
 0x2e0   : > { %p1314_p5 = scmp.lt.s32.totalorder %s1312_s0, %s1308_s21 }
 0x2e1   : > { %p1310_p8 = pnand %p1309_p3, %p1475_p9 }
 0x2e2   : > { %p1315_p6 = por %p1314_p5, %p1313_p2 }
 0x2e3   : > { %p1311_p0 = pneg %p1310_p8 }
 0x2e5   : > { %p1316_p4 = pnand %p1315_p6, %p1311_p0 }
 0x2e7   : > { %1319 = shalt.err (!%p1316_p4)
}
 0x2e8   : > { %1136 = dma.vmem_to_hbm [thread:$0]  (%p1475_p9), %s1742_s17, 1024, %s1749_s25, %s875_s14, %s1391_s13, %s1391_s13, %s1392_s15  }
 0x2e9 PF: > { %s928_s7 = sand.u32 1, %s1362_s18   ;;  %p1148_p7 = pnand %p1064_p12, %p1482_p11 }
 0x2ea   : > { %s929_s29 = scalar_lea.sflag [#allocation5], %s928_s7 }
 0x2eb   : > { %p1149_p10 = pneg %p1148_p7 }
 0x2ed   : > { %1353 = dma.done.wait (%p1149_p10), %s929_s29, 1024  }
 0x2ee   : > { %1355 = vsyncadd (%p1149_p10), %s929_s29, 4294966272  ;;  %s938_s10 = scalar_lea.sflag [#allocation10], %s928_s7 }
 0x2ef   : > { %1357 = dma.done.wait (%p1149_p10), %s938_s10, 1024  }
 0x2f0   : > { %1359 = vsyncadd (%p1149_p10), %s938_s10, 4294966272  ;;  %s28_s23 = sadd.s32 1, %s1382_s23   ;;  %s1815_s6 = sld [smem:[#allocation16_spill]] }
 0x2f1   : > { %p25_p1 = scmp.ge.s32.totalorder %s28_s23, 4   ;;  %s1816_s13 = sld [smem:[#allocation15_spill]] }
 0x2f2   : > { %s1817_s18 = smov %s1366_s19  ;;  %s1818_s19 = smov %s1370_s20 }
 0x2f3   : > { %s1820_s21 = smov %s1378_s22  ;;  %27 = sbr.rel (!%p25_p1) target bundleno = 12 (0xc), region = 115 }
 0x2f6   : > { %s1819_s20 = smov %s1815_s6 }
 0x2f7   : > { %s1821_s22 = smov %s1816_s13 }
 0x2f8   :  { %943 = vsyncpa [#allocation4], 1 }
 0x2f9   :  { %945 = vsyncpa [#allocation4 + $0x1], 1 }
 0x2fa   :  { %946 = vsyncpa [#allocation7], 1 }
 0x2fb   :  { %948 = vsyncpa [#allocation7 + $0x1], 1 }
 0x2fc   :  { %949 = vsyncpa [#allocation5], 1 }
 0x2fd   :  { %951 = vsyncpa [#allocation5 + $0x1], 1 }
 0x2fe   :  { %952 = vsyncpa [#allocation10], 1 }
 0x2ff   :  { %954 = vsyncpa [#allocation10 + $0x1], 1 }

</bundles_post_ra>
